<compile_context>
chip_gen: v6e
topology: v6e:2x2x1
jax: 0.10.0
libtpu: 0.0.40
codegen_flags: <defaults>
</compile_context>

<pallas_src>
import jax
import jax.numpy as jnp
from jax.experimental import pallas as pl
from jax.experimental.pallas import tpu as pltpu


def _linreg_kernel(x_ref, w_ref, b_ref, o_ref):
    # x_ref: [TR, W] VMEM   (W = pack*F, lane-dense when 128 % F == 0)
    # w_ref: [W, pack] VMEM (block-diagonal packed weight, resident across grid steps)
    # b_ref: (1,) SMEM      (scalar bias)
    # o_ref: [TR, pack] VMEM
    y = jnp.dot(x_ref[...], w_ref[...], preferred_element_type=jnp.float32)
    o_ref[...] = (y + b_ref[0]).astype(o_ref.dtype)


def _round_up(x, m):
    return (x + m - 1) // m * m


def _pick_block_rows(total_rows, target_rows=2048, min_rows=256):
    """Pick packed-row tile size: big enough to hide per-step overhead (~1 MiB f32 tiles),
    but with >= 4 grid steps when there is enough work (keeps both v7x TensorCores fed)."""
    if total_rows >= 4 * target_rows:
        return target_rows
    if total_rows >= 4 * min_rows:
        return max(min_rows, (total_rows // 4) // 8 * 8)   # ~4 steps, multiple of 8
    return min(target_rows, total_rows)                    # tiny problem: 1 step


def linear_regression_forward(x, weight, bias):
    """y = (x @ weight.T + bias).squeeze(1) for out_features == 1.

    x:      [B, F] float32
    weight: [1, F]  (PyTorch nn.Linear convention [out_features, in_features])
    bias:   [1]
    returns [B]
    """
    B, F = x.shape
    O, F2 = weight.shape
    assert O == 1 and F2 == F, "kernel specialized to out_features == 1 (squeeze(1) head)"

    # Lane packing: fold `pack` consecutive samples into one 128-wide row (zero-copy reshape).
    pack = 128 // F if (F < 128 and 128 % F == 0) else 1
    W = pack * F

    # Pad batch only to the tiny row granularity (8 sublanes worth of packed rows).
    row_quantum = 8 * pack
    B_pad = _round_up(B, row_quantum)
    if B_pad != B:
        x = jnp.pad(x, ((0, B_pad - B), (0, 0)))
    R = B_pad // pack
    x_packed = x.reshape(R, W)

    # Block-diagonal packed weight [W, pack]: column g carries `weight` over the feature
    # slots of the g-th sample packed into each row.  Built once at trace time (2 KiB).
    w_row = weight.reshape(F).astype(x.dtype)
    eye = jnp.eye(pack, dtype=x.dtype)                               # [pack, pack]
    w_seg = (eye[:, None, :] * w_row[None, :, None]).reshape(W, pack)

    bias = bias.astype(jnp.float32)

    block_rows = _pick_block_rows(R)
    grid = (pl.cdiv(R, block_rows),)   # ragged last tile handled by Pallas (masked writes)

    out = pl.pallas_call(
        _linreg_kernel,
        out_shape=jax.ShapeDtypeStruct((R, pack), x.dtype),
        grid=grid,
        in_specs=[
            pl.BlockSpec((block_rows, W), lambda i: (i, 0)),
            pl.BlockSpec((W, pack), lambda i: (0, 0)),
            pl.BlockSpec(memory_space=pltpu.MemorySpace.SMEM),
        ],
        out_specs=pl.BlockSpec((block_rows, pack), lambda i: (i, 0)),
        compiler_params=pltpu.CompilerParams(
            dimension_semantics=("parallel",)),   # shards grid steps across v7x's 2 TCs
        cost_estimate=pl.CostEstimate(
            flops=2 * B_pad * F,
            transcendentals=0,
            bytes_accessed=4 * (B_pad * F + W * pack + B_pad)),
    )(x_packed, w_seg, bias)

    # Packed [R, pack] -> flat [B_pad] is the inverse of the input packing; drop pad rows.
    return out.reshape(B_pad)[:B]


if __name__ == "__main__":
    in_features, out_features = 32, 1

    key = jax.random.PRNGKey(0)
    kx, kw, kb, kx2 = jax.random.split(key, 4)

    bound = 1.0 / (in_features ** 0.5)
    weight = jax.random.uniform(kw, (out_features, in_features),
                                minval=-bound, maxval=bound, dtype=jnp.float32)
    bias = jax.random.uniform(kb, (out_features,),
                              minval=-bound, maxval=bound, dtype=jnp.float32)

    # Small batch (single grid step, padded to the packed-row granularity).
    batch = 8
    x = jax.random.normal(kx, (batch, in_features), dtype=jnp.float32)
    y = jax.block_until_ready(linear_regression_forward(x, weight, bias))
    y_ref = jnp.sum(x * weight[0], axis=-1) + bias[0]
    assert y.shape == (batch,), y.shape
    assert jnp.allclose(y, y_ref, atol=1e-4, rtol=1e-4)

    # Larger batch: exercises the multi-step, megacore-parallel, lane-packed path (grid of 4).
    big_batch = 4096
    xb = jax.random.normal(kx2, (big_batch, in_features), dtype=jnp.float32)
    yb = jax.block_until_ready(linear_regression_forward(xb, weight, bias))
    yb_ref = jnp.sum(xb * weight[0], axis=-1) + bias[0]
    assert yb.shape == (big_batch,), yb.shape
    assert jnp.allclose(yb, yb_ref, atol=1e-4, rtol=1e-4)

    print("KERNEL_OK")
</pallas_src>

<mosaic_0001>
module attributes {stable_mosaic.version = 11 : i64} {
  func.func @_linreg_kernel(%arg0: i32, %arg1: memref<8x128xf32, #tpu.memory_space<vmem>>, %arg2: memref<128x4xf32, #tpu.memory_space<vmem>>, %arg3: memref<1xf32, #tpu.memory_space<smem>>, %arg4: memref<8x4xf32, #tpu.memory_space<vmem>>) attributes {dimension_semantics = [#tpu.dimension_semantics<parallel>], iteration_bounds = array<i64: 1>, scalar_prefetch = 0 : i64, scratch_operands = 0 : i64, tpu.core_type = #tpu.core_type<tc>, window_params = [{transform_indices = @transform_0, window_bounds = array<i64: 8, 128>}, {pipeline_mode = #tpu.pipeline_mode<synchronous>, transform_indices = @transform_1, window_bounds = array<i64: 128, 4>}, {transform_indices = @transform_2, window_bounds = array<i64: 1>}, {transform_indices = @transform_3, window_bounds = array<i64: 8, 4>}]} {
    %c0 = arith.constant 0 : index
    %c0_0 = arith.constant 0 : index
    %0 = vector.load %arg1[%c0, %c0_0] : memref<8x128xf32, #tpu.memory_space<vmem>>, vector<8x128xf32>
    %c0_1 = arith.constant 0 : index
    %c0_2 = arith.constant 0 : index
    %1 = vector.load %arg2[%c0_1, %c0_2] : memref<128x4xf32, #tpu.memory_space<vmem>>, vector<128x4xf32>
    %cst = arith.constant dense<0.000000e+00> : vector<8x4xf32>
    %2 = tpu.matmul %0, %1, %cst {dimension_numbers = #tpu.dot_dimension_numbers<[1], [0], [0], [1], [0, 0, 1, 1], [], []>} : vector<8x128xf32>, vector<128x4xf32>, vector<8x4xf32> -> vector<8x4xf32>
    %c0_3 = arith.constant 0 : index
    %3 = memref.load %arg3[%c0_3] : memref<1xf32, #tpu.memory_space<smem>>
    %4 = vector.broadcast %3 : f32 to vector<8x4xf32>
    %5 = arith.addf %2, %4 : vector<8x4xf32>
    %c0_4 = arith.constant 0 : index
    %c0_5 = arith.constant 0 : index
    %6 = vector.load %arg4[%c0_4, %c0_5] : memref<8x4xf32, #tpu.memory_space<vmem>>, vector<8x4xf32>
    tpu.vector_store %arg4[%c0_4, %c0_5], %5 {strides = array<i32>} : memref<8x4xf32, #tpu.memory_space<vmem>>, vector<8x4xf32>,
    return
  }
  func.func @transform_0(%arg0: i32) -> (i32, i32) {
    %c0_i32 = arith.constant 0 : i32
    %c0_i32_0 = arith.constant 0 : i32
    return %arg0, %c0_i32 : i32, i32
  }
  func.func @transform_1(%arg0: i32) -> (i32, i32) {
    %c0_i32 = arith.constant 0 : i32
    %c0_i32_0 = arith.constant 0 : i32
    %c0_i32_1 = arith.constant 0 : i32
    return %c0_i32, %c0_i32_0 : i32, i32
  }
  func.func @transform_2(%arg0: i32) -> i32 {
    %c0_i32 = arith.constant 0 : i32
    %c0_i32_0 = arith.constant 0 : i32
    return %c0_i32 : i32
  }
  func.func @transform_3(%arg0: i32) -> (i32, i32) {
    %c0_i32 = arith.constant 0 : i32
    %c0_i32_0 = arith.constant 0 : i32
    return %arg0, %c0_i32 : i32, i32
  }
}

</mosaic_0001>

<bundles_post_ra>
// kernel: tpu_custom_call.1
= control target key start
LH: loop header
LB: loop body
LE: loop exit
PB: predicated region body
PF: predicated region fallthrough
CT: control target
= control target key end

     0   :  { %v164_v0 = vmov 0.0   ;;  %vm165_vm0 = vmmov 0   ;;  %vm104_vm1 = vcmask 31744   ;;  %s243_s1 = inlined_call_operand.vmem [shape: f32[128,4], index: 1, kind: input, shape index: {}]   ;;  %s244_s0 = inlined_call_operand.vmem [shape: f32[8,128], index: 0, kind: input, shape index: {}]   ;;  %s245_s2 = inlined_call_operand.<no memory space> [shape: f32[1], index: 2, kind: input, shape index: {}]   ;;  %s246_s3 = inlined_call_operand.vmem [shape: f32[8,4], index: 3, kind: output, shape index: {}]  }
   0x1   :  { %127 = vmatprep.subr.mxu0 %v164_v0  ;;  %v31_v1 = vld [vmem:[%s243_s1 + $0x78] sm:$0xff]  ;;  %v30_v2 = vld [vmem:[%s243_s1 + $0x70] sm:$0xff]  ;;  %159 = vmatprep.mubr.msk.f32.mxu0 %vm165_vm0, %v164_v0  ;;  %v29_v3 = vld [vmem:[%s243_s1 + $0x68] sm:$0xff]  ;;  %v33_v18 = vstv %s245_s2 }
   0x2   :  { %128 = vmatpush3.msra.mxu0 %v31_v1  ;;  %v28_v4 = vld [vmem:[%s243_s1 + $0x60] sm:$0xff]  ;;  %v27_v5 = vld [vmem:[%s243_s1 + $0x58] sm:$0xff]  ;;  %v26_v6 = vld [vmem:[%s243_s1 + $0x50] sm:$0xff] }
   0x3   :  { %129 = vmatprep.subr.mxu0 %v164_v0  ;;  %v25_v7 = vld [vmem:[%s243_s1 + $0x48] sm:$0xff]  ;;  %v24_v8 = vld [vmem:[%s243_s1 + $0x40] sm:$0xff]  ;;  %v23_v9 = vld [vmem:[%s243_s1 + $0x38] sm:$0xff] }
   0x4   :  { %130 = vmatpush3.msra.mxu0 %v30_v2  ;;  %v22_v10 = vld [vmem:[%s243_s1 + $0x30] sm:$0xff]  ;;  %v21_v11 = vld [vmem:[%s243_s1 + $0x28] sm:$0xff]  ;;  %v20_v12 = vld [vmem:[%s243_s1 + $0x20] sm:$0xff] }
   0x5   :  { %131 = vmatprep.subr.mxu0 %v164_v0  ;;  %v19_v13 = vld [vmem:[%s243_s1 + $0x18] sm:$0xff]  ;;  %v18_v14 = vld [vmem:[%s243_s1 + $0x10] sm:$0xff]  ;;  %v17_v15 = vld [vmem:[%s243_s1 + $0x8] sm:$0xff] }
   0x6   :  { %132 = vmatpush3.msra.mxu0 %v29_v3  ;;  %v16_v16 = vld [vmem:[%s243_s1] sm:$0xff] }
   0x7   :  { %133 = vmatprep.subr.mxu0 %v164_v0  ;;  %v15_v17 = vld [vmem:[%s244_s0] sm:$0xff] }
   0x8   :  { %134 = vmatpush3.msra.mxu0 %v28_v4 }
   0x9   :  { %135 = vmatprep.subr.mxu0 %v164_v0 }
   0xa   :  { %136 = vmatpush3.msra.mxu0 %v27_v5 }
   0xb   :  { %137 = vmatprep.subr.mxu0 %v164_v0 }
   0xc   :  { %138 = vmatpush3.msra.mxu0 %v26_v6 }
   0xd   :  { %139 = vmatprep.subr.mxu0 %v164_v0 }
   0xe   :  { %140 = vmatpush3.msra.mxu0 %v25_v7 }
   0xf   :  { %141 = vmatprep.subr.mxu0 %v164_v0 }
  0x10   :  { %142 = vmatpush3.msra.mxu0 %v24_v8 }
  0x11   :  { %143 = vmatprep.subr.mxu0 %v164_v0 }
  0x12   :  { %144 = vmatpush3.msra.mxu0 %v23_v9 }
  0x13   :  { %145 = vmatprep.subr.mxu0 %v164_v0 }
  0x14   :  { %146 = vmatpush3.msra.mxu0 %v22_v10 }
  0x15   :  { %147 = vmatprep.subr.mxu0 %v164_v0 }
  0x16   :  { %148 = vmatpush3.msra.mxu0 %v21_v11 }
  0x17   :  { %149 = vmatprep.subr.mxu0 %v164_v0 }
  0x18   :  { %150 = vmatpush3.msra.mxu0 %v20_v12 }
  0x19   :  { %151 = vmatprep.subr.mxu0 %v164_v0 }
  0x1a   :  { %152 = vmatpush3.msra.mxu0 %v19_v13 }
  0x1b   :  { %153 = vmatprep.subr.mxu0 %v164_v0 }
  0x1c   :  { %154 = vmatpush3.msra.mxu0 %v18_v14 }
  0x1d   :  { %155 = vmatprep.subr.mxu0 %v164_v0 }
  0x1e   :  { %156 = vmatpush3.msra.mxu0 %v17_v15 }
  0x1f   :  { %157 = vmatprep.subr.mxu0 %v164_v0 }
  0x20   :  { %158 = vmatpush3.msra.mxu0 %v16_v16 }
  0x21   :  { %160 = vmatmul.mubr.f32.vlgmr.msra.gmra.mxu0 %v15_v17 }
  0xe1   :  { %v100_v19 = vpop.f32.mrf.mxu0 }
  0xe2   :  { %v101_v20 = vadd.f32 %v100_v19, %v33_v18 }
  0xe3   :  { %v161_v21 = vpop.f32.mrf.mxu0 }
  0xe4   :  { %105 = vst.msk [vmem:[%s246_s3] sm:$0xff] %vm104_vm1, %v101_v20 }

</bundles_post_ra>
